<compile_context>
chip_gen: v5e
topology: v5e:2x2
jax: 0.10.0
libtpu: 0.0.40
codegen_flags: <defaults>
</compile_context>

<pallas_src>
import math

import jax
import jax.numpy as jnp
from jax.experimental import pallas as pl
from jax.experimental.pallas import tpu as pltpu


def _round_up(x, m):
    return ((x + m - 1) // m) * m


def _out_size(dim, K, S):
    """PyTorch MaxPool2d ceil_mode=True output size (padding=0, dilation=1)."""
    o = math.ceil((dim - K) / S) + 1
    # ceil_mode rule: the last window must start strictly inside the input.
    if (o - 1) * S >= dim:
        o -= 1
    return o


def _make_maxpool_kernel(H, W, K, S, out_h, out_w):
    """Kernel over a (B_TILE, H*W) block -> (B_TILE, out_h*out_w) block.

    All window bounds are static Python ints; the body is a single bulk load,
    a handful of static value slices + elementwise maxima, and a single bulk
    store.  No per-row strided loads/stores, no wrapper-side data movement.
    """

    def kernel(x_ref, o_ref):
        x = x_ref[...]                                   # (B_TILE, H*W), one load
        cols = []
        for oi in range(out_h):
            h0, h1 = oi * S, min(oi * S + K, H)          # ceil_mode: clip rows
            band = x[:, h0 * W:(h0 + 1) * W]             # (B_TILE, W)
            for h in range(h0 + 1, h1):                  # max over window rows
                band = jnp.maximum(band, x[:, h * W:(h + 1) * W])
            for oj in range(out_w):
                w0, w1 = oj * S, min(oj * S + K, W)      # ceil_mode: clip cols
                c = band[:, w0:w0 + 1]                   # (B_TILE, 1)
                for w in range(w0 + 1, w1):              # max over window cols
                    c = jnp.maximum(c, band[:, w:w + 1])
                cols.append(c)
        o_ref[...] = jnp.concatenate(cols, axis=1)       # one (B_TILE, oh*ow) store

    return kernel


def maxpool2d_ceil(x_nchw, kernel_size=3, stride=None, b_tile=16384):
    """MaxPool2d with ceil_mode=True, padding=0, dilation=1 (PyTorch semantics)."""
    N, C, H, W = x_nchw.shape
    K = kernel_size
    S = stride if stride is not None else kernel_size
    out_h = _out_size(H, K, S)
    out_w = _out_size(W, K, S)
    HW, OHW = H * W, out_h * out_w

    B = N * C
    # Natural b-major layout: (N,C,H,W) -> (B, H*W) is a no-copy reshape.
    x2d = x_nchw.reshape(B, HW)

    # Tile the B axis. Blocks need the second-minor dim to be a multiple of 8
    # (or equal to the full dim); cap so the grid has >=2 steps when B allows
    # (v7x megacore sharding).  Non-divisible tails are masked by Pallas (each
    # output row depends only on its own input row, so OOB garbage is dropped).
    b_tile = max(8, _round_up(b_tile, 8))
    if B <= 16:
        B_TILE = B                                   # single full-extent block
    else:
        B_TILE = min(b_tile, _round_up(pl.cdiv(B, 2), 8))
    grid = (pl.cdiv(B, B_TILE),)

    kernel = _make_maxpool_kernel(H, W, K, S, out_h, out_w)

    out2d = pl.pallas_call(
        kernel,
        out_shape=jax.ShapeDtypeStruct((B, OHW), x_nchw.dtype),
        grid=grid,
        in_specs=[pl.BlockSpec((B_TILE, HW), lambda i: (i, 0))],
        out_specs=pl.BlockSpec((B_TILE, OHW), lambda i: (i, 0)),
        compiler_params=pltpu.CompilerParams(
            dimension_semantics=("parallel",),       # shard B across TCs on v7x
            vmem_limit_bytes=48 * 1024 * 1024,       # fits v7x 64MiB; >v5e 16MiB default
        ),
    )(x2d)

    # (B, oh*ow) -> (N, C, oh, ow): free reshape (same row-major flat order).
    return out2d.reshape(N, C, out_h, out_w)


def _reference_maxpool(x_nchw, kernel_size=3, stride=None):
    """Pure-JAX reference with the same ceil_mode semantics."""
    N, C, H, W = x_nchw.shape
    K = kernel_size
    S = stride if stride is not None else kernel_size
    out_h = _out_size(H, K, S)
    out_w = _out_size(W, K, S)
    rows = []
    for i in range(out_h):
        cols = []
        for j in range(out_w):
            h0, h1 = i * S, min(i * S + K, H)
            w0, w1 = j * S, min(j * S + K, W)
            cols.append(jnp.max(x_nchw[:, :, h0:h1, w0:w1], axis=(2, 3)))
        rows.append(jnp.stack(cols, axis=-1))
    return jnp.stack(rows, axis=2)


if __name__ == "__main__":
    key = jax.random.PRNGKey(0)

    # Mirror the reference script: flat input reshaped to (-1, 1, 5, 5).
    raw = jax.random.normal(key, (2, 25), dtype=jnp.float32)
    x = jnp.reshape(raw, (-1, 1, 5, 5))                 # (2, 1, 5, 5)

    out = jax.block_until_ready(maxpool2d_ceil(x, kernel_size=3))
    ref = _reference_maxpool(x, kernel_size=3)
    assert out.shape == (2, 1, 2, 2), out.shape
    assert jnp.allclose(out, ref), "Pallas maxpool mismatch vs reference (small)"

    # Secondary check: grid = 2 (v7x-style split) + masked non-divisible tail.
    raw2 = jax.random.normal(jax.random.PRNGKey(1), (300, 25), dtype=jnp.float32)
    x2 = jnp.reshape(raw2, (-1, 1, 5, 5))               # (300, 1, 5, 5)
    out2 = jax.block_until_ready(maxpool2d_ceil(x2, kernel_size=3))
    ref2 = _reference_maxpool(x2, kernel_size=3)
    assert out2.shape == (300, 1, 2, 2), out2.shape
    assert jnp.allclose(out2, ref2), "Pallas maxpool mismatch vs reference (grid=2)"

    # Tertiary check: many grid steps with a small explicit tile.
    out3 = jax.block_until_ready(maxpool2d_ceil(x2, kernel_size=3, b_tile=64))
    assert jnp.allclose(out3, ref2), "Pallas maxpool mismatch vs reference (tiled)"

    print("KERNEL_OK")
</pallas_src>

<mosaic_0001>
module attributes {stable_mosaic.version = 11 : i64} {
  func.func @kernel(%arg0: i32, %arg1: memref<2x25xf32, #tpu.memory_space<vmem>>, %arg2: memref<2x4xf32, #tpu.memory_space<vmem>>) attributes {dimension_semantics = [#tpu.dimension_semantics<parallel>], iteration_bounds = array<i64: 1>, scalar_prefetch = 0 : i64, scratch_operands = 0 : i64, tpu.core_type = #tpu.core_type<tc>, window_params = [{transform_indices = @transform_0, window_bounds = array<i64: 2, 25>}, {transform_indices = @transform_1, window_bounds = array<i64: 2, 4>}]} {
    %c0 = arith.constant 0 : index
    %c0_0 = arith.constant 0 : index
    %0 = vector.load %arg1[%c0, %c0_0] : memref<2x25xf32, #tpu.memory_space<vmem>>, vector<2x25xf32>
    %1 = vector.extract_strided_slice %0 {offsets = [0, 0], sizes = [2, 5], strides = [1, 1]} : vector<2x25xf32> to vector<2x5xf32>
    %2 = vector.extract_strided_slice %0 {offsets = [0, 5], sizes = [2, 5], strides = [1, 1]} : vector<2x25xf32> to vector<2x5xf32>
    %3 = arith.maximumf %1, %2 : vector<2x5xf32>
    %4 = vector.extract_strided_slice %0 {offsets = [0, 10], sizes = [2, 5], strides = [1, 1]} : vector<2x25xf32> to vector<2x5xf32>
    %5 = arith.maximumf %3, %4 : vector<2x5xf32>
    %6 = vector.extract_strided_slice %5 {offsets = [0, 0], sizes = [2, 1], strides = [1, 1]} : vector<2x5xf32> to vector<2x1xf32>
    %7 = vector.extract_strided_slice %5 {offsets = [0, 1], sizes = [2, 1], strides = [1, 1]} : vector<2x5xf32> to vector<2x1xf32>
    %8 = arith.maximumf %6, %7 : vector<2x1xf32>
    %9 = vector.extract_strided_slice %5 {offsets = [0, 2], sizes = [2, 1], strides = [1, 1]} : vector<2x5xf32> to vector<2x1xf32>
    %10 = arith.maximumf %8, %9 : vector<2x1xf32>
    %11 = vector.extract_strided_slice %5 {offsets = [0, 3], sizes = [2, 1], strides = [1, 1]} : vector<2x5xf32> to vector<2x1xf32>
    %12 = vector.extract_strided_slice %5 {offsets = [0, 4], sizes = [2, 1], strides = [1, 1]} : vector<2x5xf32> to vector<2x1xf32>
    %13 = arith.maximumf %11, %12 : vector<2x1xf32>
    %14 = vector.extract_strided_slice %0 {offsets = [0, 15], sizes = [2, 5], strides = [1, 1]} : vector<2x25xf32> to vector<2x5xf32>
    %15 = vector.extract_strided_slice %0 {offsets = [0, 20], sizes = [2, 5], strides = [1, 1]} : vector<2x25xf32> to vector<2x5xf32>
    %16 = arith.maximumf %14, %15 : vector<2x5xf32>
    %17 = vector.extract_strided_slice %16 {offsets = [0, 0], sizes = [2, 1], strides = [1, 1]} : vector<2x5xf32> to vector<2x1xf32>
    %18 = vector.extract_strided_slice %16 {offsets = [0, 1], sizes = [2, 1], strides = [1, 1]} : vector<2x5xf32> to vector<2x1xf32>
    %19 = arith.maximumf %17, %18 : vector<2x1xf32>
    %20 = vector.extract_strided_slice %16 {offsets = [0, 2], sizes = [2, 1], strides = [1, 1]} : vector<2x5xf32> to vector<2x1xf32>
    %21 = arith.maximumf %19, %20 : vector<2x1xf32>
    %22 = vector.extract_strided_slice %16 {offsets = [0, 3], sizes = [2, 1], strides = [1, 1]} : vector<2x5xf32> to vector<2x1xf32>
    %23 = vector.extract_strided_slice %16 {offsets = [0, 4], sizes = [2, 1], strides = [1, 1]} : vector<2x5xf32> to vector<2x1xf32>
    %24 = arith.maximumf %22, %23 : vector<2x1xf32>
    %25 = tpu.concatenate %10, %13, %21, %24 in 1 : vector<2x1xf32>, vector<2x1xf32>, vector<2x1xf32>, vector<2x1xf32> -> vector<2x4xf32>
    %c0_1 = arith.constant 0 : index
    %c0_2 = arith.constant 0 : index
    %26 = vector.load %arg2[%c0_1, %c0_2] : memref<2x4xf32, #tpu.memory_space<vmem>>, vector<2x4xf32>
    tpu.vector_store %arg2[%c0_1, %c0_2], %25 {strides = array<i32>} : memref<2x4xf32, #tpu.memory_space<vmem>>, vector<2x4xf32>,
    return
  }
  func.func @transform_0(%arg0: i32) -> (i32, i32) {
    %c0_i32 = arith.constant 0 : i32
    %c0_i32_0 = arith.constant 0 : i32
    return %arg0, %c0_i32 : i32, i32
  }
  func.func @transform_1(%arg0: i32) -> (i32, i32) {
    %c0_i32 = arith.constant 0 : i32
    %c0_i32_0 = arith.constant 0 : i32
    return %arg0, %c0_i32 : i32, i32
  }
}

</mosaic_0001>

<bundles_post_ra>
// kernel: tpu_custom_call.1
= control target key start
LH: loop header
LB: loop body
LE: loop exit
PB: predicated region body
PF: predicated region fallthrough
CT: control target
= control target key end

     0   :  { %6 = vsyncpa [#allocation3], 0  ;;  %s172_s0 = inlined_call_operand.hbm [shape: f32[2,25], index: 0, kind: input, shape index: {}]   ;;  %s173_s1 = inlined_call_operand.hbm [shape: f32[2,4], index: 1, kind: output, shape index: {}]  }
   0x1   :  { %7 = vsyncpa [#allocation4], 0  ;;  %s13_s8 = sshll.u32 %s172_s0, 4  ;;  %s148_s9 = smov [#allocation2]   ;;  %s14_s8 = int_to_ptr.hbm [resolvable:$true] %s13_s8 }
   0x2   :  { %s15_s10 = sshll.u32 %s148_s9, 4  ;;  %s16_s10 = int_to_ptr.vmem [resolvable:$true] %s15_s10 }
   0x3   :  { %18 = dma.hbm_to_vmem [thread:$0]  %s14_s8, 32, %s16_s10, [#allocation3]  }
   0x4   :  { %144 = dma.done.wait [#allocation3], 32  }
   0x5   :  { %145 = vsyncadd [#allocation3], 4294967264  ;;  %v23_v0 = vld [vmem:[#allocation2] sm:$0x3]  ;;  %s149_s11 = smov 123   ;;  %s150_s12 = smov 118  }
   0x6   :  { %25 = vrot.lane.b32.xlu0 %v23_v0, %s149_s11  ;;  %s151_s13 = smov 126   ;;  %s152_s14 = smov 127   ;;  %vm63_vm0 = vcmask 7168   ;;  %vm65_vm1 = vcmask 15360   ;;  %vm67_vm2 = vcmask 23552   ;;  %vm69_vm3 = vcmask 25600  }
   0x7   :  { %s153_s0 = smov 113   ;;  %s154_s15 = smov 115  }
   0x8   :  { %s155_s16 = smov [#allocation5]   ;;  %s78_s20 = sshll.u32 %s173_s1, 4  ;;  %s79_s20 = int_to_ptr.hbm [resolvable:$true] %s78_s20 }
   0x9   :  { %s76_s17 = sshll.u32 %s155_s16, 4  ;;  %s77_s17 = int_to_ptr.vmem [resolvable:$true] %s76_s17 }
   0xe   :  { %29 = vrot.lane.b32.xlu0 %v23_v0, %s150_s12 }
  0x78   :  { %v26_v1 = vpop.permute.xlu0 %25 }
  0x79   :  { %v28_v2 = vmax.f32 %v23_v0, %v26_v1 }
  0x7b   :  { %47 = vrot.lane.b32.xlu2 %v28_v2, %s151_s13  ;;  %43 = vrot.lane.b32.xlu1 %v28_v2, %s152_s14 }
  0x80   :  { %v30_v3 = vpop.permute.xlu0 %29 }
  0x81   :  { %v32_v4 = vmax.f32 %v28_v2, %v30_v3 }
  0x83   :  { %38 = vrot.lane.b32.xlu2 %v32_v4, %s151_s13  ;;  %34 = vrot.lane.b32.xlu1 %v32_v4, %s152_s14 }
  0xd5   :  { %v48_v7 = vpop.permute.xlu2 %47 }
  0xdd   :  { %v39_v11 = vpop.permute.xlu2 %38 }
  0xed   :  { %v44_v5 = vpop.permute.xlu1 %43 }
  0xee   :  { %v46_v6 = vmax.f32 %v28_v2, %v44_v5 }
  0xf0   :  { %v50_v8 = vmax.f32 %v46_v6, %v48_v7  ;;  %60 = vrot.lane.b32.xlu2 %v46_v6, %s153_s0 }
  0xf2   :  { %56 = vrot.lane.b32.xlu1 %v50_v8, %s154_s15 }
  0xf5   :  { %v35_v9 = vpop.permute.xlu1 %34 }
  0xf6   :  { %v37_v10 = vmax.f32 %v32_v4, %v35_v9 }
  0xf8   :  { %52 = vrot.lane.b32.xlu0 %v37_v10, %s151_s13  ;;  %v41_v12 = vmax.f32 %v37_v10, %v39_v11 }
 0x14a   :  { %v61_v16 = vpop.permute.xlu2 %60 }
 0x164   :  { %v57_v14 = vpop.permute.xlu1 %56 }
 0x16a   :  { %v53_v13 = vpop.permute.xlu0 %52 }
 0x16b   :  { %v64_v15 = vsel %vm63_vm0, %v41_v12, %v53_v13 }
 0x16c   :  { %v66_v17 = vsel %vm65_vm1, %v64_v15, %v57_v14 }
 0x16d   :  { %v68_v18 = vsel %vm67_vm2, %v66_v17, %v61_v16 }
 0x16e   :  { %70 = vst.msk [vmem:[#allocation5] sm:$0x3] %vm69_vm3, %v68_v18 }
 0x16f   :  { %81 = dma.vmem_to_hbm [thread:$0]  %s77_s17, 32, %s79_s20, [#allocation4]  }
 0x170   :  { %146 = dma.done.wait [#allocation4], 32  }
 0x171   :  { %147 = vsyncadd [#allocation4], 4294967264 }
 0x172   :  { %86 = vsyncpa [#allocation3], 1 }
 0x173   :  { %87 = vsyncpa [#allocation4], 1 }

</bundles_post_ra>
